<compile_context>
chip_gen: v5e
topology: v5e:2x2
jax: 0.10.0
libtpu: 0.0.40
codegen_flags: <defaults>
</compile_context>

<pallas_src>
import functools
import math

import jax
import jax.numpy as jnp
from jax.experimental import pallas as pl
from jax.experimental.pallas import tpu as pltpu


def _sentiment_kernel(x_ref, w_ref, b_ref, o_ref, acc_ref, *, inv_seq_len):
    # x_ref: (tb, ts, Df)   w_ref: (2, Df)   b_ref: (1, 2)
    # o_ref: (tb, 1, 2)     acc_ref: (tb, Df) f32 running sum over the seq axis
    s = pl.program_id(1)

    @pl.when(s == 0)
    def _():
        acc_ref[...] = jnp.zeros_like(acc_ref)

    # Streaming sum over the (folded) sequence axis. f32 accumulation via the
    # reduce's dtype — avoids materializing a widened copy of the whole block.
    acc_ref[...] += jnp.sum(x_ref[...], axis=1, dtype=jnp.float32)

    @pl.when(s == pl.num_programs(1) - 1)
    def _():
        mean = acc_ref[...] * jnp.float32(inv_seq_len)              # (tb, Df)
        w = w_ref[...].astype(jnp.float32)                          # (2, Df)
        b = b_ref[...].astype(jnp.float32)                          # (1, 2)
        # N=2 projection as two 2-D lane reductions (native layout, no MXU,
        # no (tb, 2, Df) broadcast intermediate). Runs once per batch tile.
        l0 = jnp.sum(mean * w[0:1, :], axis=-1, keepdims=True)      # (tb, 1)
        l1 = jnp.sum(mean * w[1:2, :], axis=-1, keepdims=True)      # (tb, 1)
        logits = jnp.concatenate([l0, l1], axis=-1) + b             # (tb, 2)
        probs = 1.0 / (1.0 + jnp.exp(-logits))
        o_ref[...] = probs[:, None, :].astype(o_ref.dtype)


def _pick_tile(n, cap, align):
    """Largest divisor of n that is <= cap and (== n or a multiple of align)."""
    for d in range(min(n, cap), 0, -1):
        if n % d == 0 and (d == n or d % align == 0):
            return d
    return n


def sentiment_analysis(x, weight, bias, *, target_block_bytes=8 * 1024 * 1024):
    """x: (B, S, D); weight: (2, D) (PyTorch nn.Linear layout); bias: (2,)."""
    B, S, D = x.shape
    itemsize = jnp.dtype(x.dtype).itemsize
    # Dtype-aware sublane alignment: (8,128) f32, (16,128) bf16, (32,128) int8.
    sub_align = {4: 8, 2: 16, 1: 32}.get(itemsize, 8)

    # ---- lane folding: make the feature (lane) axis a multiple of 128 ------
    k = 1
    if D % 128 != 0:
        k0 = 128 // math.gcd(D, 128)
        kk = k0
        while kk <= S:
            if S % kk == 0:
                k = kk
                break
            kk += k0
    Df, Sf = D * k, S // k
    x_f = x.reshape(B, Sf, Df)
    # Tiled weight: w_f[:, j*D + d] == weight[:, d], so sum over the folded
    # lane axis equals the original sum over (S, D).
    w_f = jnp.tile(weight.astype(jnp.float32), (1, k))              # (2, Df)
    b_f = bias.reshape(1, 2).astype(jnp.float32)                    # (1, 2)

    # ---- tile sizes ---------------------------------------------------------
    target_elems = max(1, target_block_bytes // itemsize)
    row_elems = Sf * Df
    if B >= 2:
        # Keep >= 2 blocks on the "parallel" axis (feeds both v7x TensorCores)
        # while letting tb grow toward the block-byte budget for full-seq rows.
        tb_cap = min(max(1, target_elems // row_elems), max(1, B // 2))
    else:
        tb_cap = 1
    tb = _pick_tile(B, tb_cap, 1)
    ts_cap = max(1, target_elems // (tb * Df))
    ts = _pick_tile(Sf, ts_cap, sub_align)
    grid = (B // tb, Sf // ts)

    # ---- VMEM budget derived from the blocks actually chosen ---------------
    x_block_bytes = tb * ts * Df * itemsize
    fixed_bytes = (2 * Df * 4) + (2 * 4) + (tb * 2 * 4) + (tb * Df * 4)
    vmem_limit = int(max(48 * 1024 * 1024,
                         2 * x_block_bytes + 2 * fixed_bytes + (4 << 20)))

    kernel = functools.partial(_sentiment_kernel, inv_seq_len=1.0 / S)

    out = pl.pallas_call(
        kernel,
        out_shape=jax.ShapeDtypeStruct((B, 1, 2), jnp.float32),
        grid_spec=pltpu.PrefetchScalarGridSpec(
            num_scalar_prefetch=0,
            grid=grid,
            in_specs=[
                pl.BlockSpec((tb, ts, Df), lambda i, s: (i, s, 0)),
                pl.BlockSpec((2, Df), lambda i, s: (0, 0)),
                pl.BlockSpec((1, 2), lambda i, s: (0, 0)),
            ],
            out_specs=pl.BlockSpec((tb, 1, 2), lambda i, s: (i, 0, 0)),
            scratch_shapes=[pltpu.VMEM((tb, Df), jnp.float32)],
        ),
        compiler_params=pltpu.CompilerParams(
            dimension_semantics=("parallel", "arbitrary"),
            vmem_limit_bytes=vmem_limit,
        ),
    )(x_f, w_f, b_f)
    return out.reshape(B, 2)


def _reference(x, weight, bias):
    logits = jnp.einsum("bsd,od->bso", x, weight) + bias
    return jax.nn.sigmoid(logits.mean(axis=1))


if __name__ == "__main__":
    # Small shapes consistent with the module: batch=2, seq=8, embedding_dim=32.
    B, S, D = 2, 8, 32

    key = jax.random.PRNGKey(0)
    kx, kw, kb = jax.random.split(key, 3)

    x = jax.random.normal(kx, (B, S, D), dtype=jnp.float32)

    # Deterministic init mimicking nn.Linear (uniform +-1/sqrt(in_features)).
    bound = 1.0 / jnp.sqrt(jnp.float32(D))
    weight = jax.random.uniform(kw, (2, D), minval=-bound, maxval=bound,
                                dtype=jnp.float32)
    bias = jax.random.uniform(kb, (2,), minval=-bound, maxval=bound,
                              dtype=jnp.float32)

    out = sentiment_analysis(x, weight, bias)
    out = jax.block_until_ready(out)

    ref = _reference(x, weight, bias)
    assert out.shape == (B, 2)
    assert jnp.allclose(out, ref, atol=1e-5, rtol=1e-5), (out, ref)

    print("KERNEL_OK")
</pallas_src>

<mosaic_0001>
module attributes {stable_mosaic.version = 11 : i64} {
  func.func @_sentiment_kernel(%arg0: i32, %arg1: i32, %arg2: memref<1x2x128xf32, #tpu.memory_space<vmem>>, %arg3: memref<2x128xf32, #tpu.memory_space<vmem>>, %arg4: memref<1x2xf32, #tpu.memory_space<vmem>>, %arg5: memref<1x1x2xf32, #tpu.memory_space<vmem>>, %arg6: memref<1x128xf32, #tpu.memory_space<vmem>>) attributes {dimension_semantics = [#tpu.dimension_semantics<parallel>, #tpu.dimension_semantics<arbitrary>], iteration_bounds = array<i64: 2, 1>, scalar_prefetch = 0 : i64, scratch_operands = 1 : i64, tpu.core_type = #tpu.core_type<tc>, window_params = [{transform_indices = @transform_0, window_bounds = array<i64: 1, 2, 128>}, {pipeline_mode = #tpu.pipeline_mode<synchronous>, transform_indices = @transform_1, window_bounds = array<i64: 2, 128>}, {pipeline_mode = #tpu.pipeline_mode<synchronous>, transform_indices = @transform_2, window_bounds = array<i64: 1, 2>}, {transform_indices = @transform_3, window_bounds = array<i64: 1, 1, 2>}]} {
    %c0_i32 = arith.constant 0 : i32
    %0 = arith.cmpi eq, %arg1, %c0_i32 : i32
    %1 = arith.extui %0 : i1 to i32
    %c0_i32_0 = arith.constant 0 : i32
    %2 = arith.cmpi ne, %1, %c0_i32_0 : i32
    scf.if %2 {
      %cst_9 = arith.constant 0.000000e+00 : f32
      %11 = vector.broadcast %cst_9 : f32 to vector<1x128xf32>
      %c0_10 = arith.constant 0 : index
      %c0_11 = arith.constant 0 : index
      %12 = vector.load %arg6[%c0_10, %c0_11] : memref<1x128xf32, #tpu.memory_space<vmem>>, vector<1x128xf32>
      tpu.vector_store %arg6[%c0_10, %c0_11], %11 {strides = array<i32>} : memref<1x128xf32, #tpu.memory_space<vmem>>, vector<1x128xf32>,
    } else {
    }
    %c0 = arith.constant 0 : index
    %c0_1 = arith.constant 0 : index
    %3 = vector.load %arg6[%c0, %c0_1] : memref<1x128xf32, #tpu.memory_space<vmem>>, vector<1x128xf32>
    %c0_2 = arith.constant 0 : index
    %c0_3 = arith.constant 0 : index
    %c0_4 = arith.constant 0 : index
    %4 = vector.load %arg2[%c0_2, %c0_3, %c0_4] : memref<1x2x128xf32, #tpu.memory_space<vmem>>, vector<1x2x128xf32>
    %cst = arith.constant dense<0.000000e+00> : vector<1x128xf32>
    %5 = vector.multi_reduction <add>, %4, %cst [1] : vector<1x2x128xf32> to vector<1x128xf32>
    %6 = arith.addf %3, %5 : vector<1x128xf32>
    %c0_5 = arith.constant 0 : index
    %c0_6 = arith.constant 0 : index
    %7 = vector.load %arg6[%c0_5, %c0_6] : memref<1x128xf32, #tpu.memory_space<vmem>>, vector<1x128xf32>
    tpu.vector_store %arg6[%c0_5, %c0_6], %6 {strides = array<i32>} : memref<1x128xf32, #tpu.memory_space<vmem>>, vector<1x128xf32>,
    %c0_i32_7 = arith.constant 0 : i32
    %8 = arith.cmpi eq, %arg1, %c0_i32_7 : i32
    %9 = arith.extui %8 : i1 to i32
    %c0_i32_8 = arith.constant 0 : i32
    %10 = arith.cmpi ne, %9, %c0_i32_8 : i32
    scf.if %10 {
      %c0_9 = arith.constant 0 : index
      %c0_10 = arith.constant 0 : index
      %11 = vector.load %arg6[%c0_9, %c0_10] : memref<1x128xf32, #tpu.memory_space<vmem>>, vector<1x128xf32>
      %cst_11 = arith.constant 1.250000e-01 : f32
      %12 = vector.broadcast %cst_11 : f32 to vector<1x128xf32>
      %13 = arith.mulf %11, %12 : vector<1x128xf32>
      %c0_12 = arith.constant 0 : index
      %c0_13 = arith.constant 0 : index
      %14 = vector.load %arg3[%c0_12, %c0_13] : memref<2x128xf32, #tpu.memory_space<vmem>>, vector<2x128xf32>
      %c0_14 = arith.constant 0 : index
      %c0_15 = arith.constant 0 : index
      %15 = vector.load %arg4[%c0_14, %c0_15] : memref<1x2xf32, #tpu.memory_space<vmem>>, vector<1x2xf32>
      %16 = vector.extract_strided_slice %14 {offsets = [0, 0], sizes = [1, 128], strides = [1, 1]} : vector<2x128xf32> to vector<1x128xf32>
      %17 = arith.mulf %13, %16 : vector<1x128xf32>
      %cst_16 = arith.constant dense<0.000000e+00> : vector<1xf32>
      %18 = vector.multi_reduction <add>, %17, %cst_16 [1] : vector<1x128xf32> to vector<1xf32>
      %19 = vector.shape_cast %18 : vector<1xf32> to vector<1x1xf32>
      %20 = vector.extract_strided_slice %14 {offsets = [1, 0], sizes = [1, 128], strides = [1, 1]} : vector<2x128xf32> to vector<1x128xf32>
      %21 = arith.mulf %13, %20 : vector<1x128xf32>
      %cst_17 = arith.constant dense<0.000000e+00> : vector<1xf32>
      %22 = vector.multi_reduction <add>, %21, %cst_17 [1] : vector<1x128xf32> to vector<1xf32>
      %23 = vector.shape_cast %22 : vector<1xf32> to vector<1x1xf32>
      %24 = tpu.concatenate %19, %23 in 1 : vector<1x1xf32>, vector<1x1xf32> -> vector<1x2xf32>
      %25 = arith.addf %24, %15 : vector<1x2xf32>
      %cst_18 = arith.constant 0.000000e+00 : f32
      %26 = vector.broadcast %cst_18 : f32 to vector<1x2xf32>
      %27 = arith.subf %26, %25 : vector<1x2xf32>
      %28 = math.exp %27 : vector<1x2xf32>
      %cst_19 = arith.constant 1.000000e+00 : f32
      %29 = vector.broadcast %cst_19 : f32 to vector<1x2xf32>
      %30 = arith.addf %29, %28 : vector<1x2xf32>
      %cst_20 = arith.constant 1.000000e+00 : f32
      %31 = vector.broadcast %cst_20 : f32 to vector<1x2xf32>
      %32 = arith.divf %31, %30 : vector<1x2xf32>
      %33 = vector.shape_cast %32 : vector<1x2xf32> to vector<1x1x2xf32>
      %c0_21 = arith.constant 0 : index
      %c0_22 = arith.constant 0 : index
      %c0_23 = arith.constant 0 : index
      %34 = vector.load %arg5[%c0_21, %c0_22, %c0_23] : memref<1x1x2xf32, #tpu.memory_space<vmem>>, vector<1x1x2xf32>
      tpu.vector_store %arg5[%c0_21, %c0_22, %c0_23], %33 {strides = array<i32>} : memref<1x1x2xf32, #tpu.memory_space<vmem>>, vector<1x1x2xf32>,
    } else {
    }
    return
  }
  func.func @transform_0(%arg0: i32, %arg1: i32) -> (i32, i32, i32) {
    %c0_i32 = arith.constant 0 : i32
    %c0_i32_0 = arith.constant 0 : i32
    return %arg0, %arg1, %c0_i32 : i32, i32, i32
  }
  func.func @transform_1(%arg0: i32, %arg1: i32) -> (i32, i32) {
    %c0_i32 = arith.constant 0 : i32
    %c0_i32_0 = arith.constant 0 : i32
    %c0_i32_1 = arith.constant 0 : i32
    return %c0_i32, %c0_i32_0 : i32, i32
  }
  func.func @transform_2(%arg0: i32, %arg1: i32) -> (i32, i32) {
    %c0_i32 = arith.constant 0 : i32
    %c0_i32_0 = arith.constant 0 : i32
    %c0_i32_1 = arith.constant 0 : i32
    return %c0_i32, %c0_i32_0 : i32, i32
  }
  func.func @transform_3(%arg0: i32, %arg1: i32) -> (i32, i32, i32) {
    %c0_i32 = arith.constant 0 : i32
    %c0_i32_0 = arith.constant 0 : i32
    %c0_i32_1 = arith.constant 0 : i32
    return %arg0, %c0_i32, %c0_i32_0 : i32, i32, i32
  }
}

</mosaic_0001>

<bundles_post_ra>
// kernel: tpu_custom_call.1
= control target key start
LH: loop header
LB: loop body
LE: loop exit
PB: predicated region body
PF: predicated region fallthrough
CT: control target
= control target key end

     0   :  { %8 = vsyncpa [#allocation4], 0  ;;  %s790_s0 = inlined_call_operand.hbm [shape: f32[2,2,128], index: 0, kind: input, shape index: {}]   ;;  %s791_s1 = inlined_call_operand.hbm [shape: f32[2,128], index: 1, kind: input, shape index: {}]   ;;  %s792_s2 = inlined_call_operand.vmem [shape: f32[1,2], index: 2, kind: input, shape index: {}]   ;;  %s793_s3 = inlined_call_operand.hbm [shape: f32[2,1,2], index: 3, kind: output, shape index: {}]  }
   0x1   :  { %10 = vsyncpa [#allocation4 + $0x1], 0 }
   0x2   :  { %11 = vsyncpa [#allocation7], 0 }
   0x3   :  { %12 = vsyncpa [#allocation5], 0 }
   0x4   :  { %14 = vsyncpa [#allocation5 + $0x1], 0  ;;  %s637_s12 = smov 0   ;;  %s639_s13 = smov 0  }
   0x5   :  { %s641_s14 = smov 0   ;;  %s643_s15 = smov 0  }
   0x6   :  { %s645_s16 = smov 0   ;;  %s647_s17 = smov 0  }
   0x7 LB: > { %s377_s18 = sadd.s32 4294967295, %s613_s17   ;;  %s378_s19 = sadd.s32 4294967294, %s613_s17   ;;  %s613_s17 = sphi %s647_s17, %s20_s17   ;;  %s609_s16 = sphi %s645_s16, %s805_s16   ;;  %s605_s15 = sphi %s643_s15, %s804_s15   ;;  %s601_s14 = sphi %s641_s14, %s803_s14   ;;  %s597_s13 = sphi %s639_s13, %s802_s13   ;;  %s593_s12 = sphi %s637_s12, %s801_s12  }
   0x8   : > { %p54_p0 = scmp.ne.s32.totalorder %s597_s13, %s593_s12  ;;  %p671_p1 = scmp.eq.s32.totalorder %s377_s18, 0 }
   0x9   : > { %p675_p2 = scmp.eq.s32.totalorder %s377_s18, 1  ;;  %p126_p3 = scmp.eq.s32.totalorder %s378_s19, 1 }
   0xa   : > { %p681_p4 = por %p671_p1, %p54_p0  ;;  %p379_p5 = scmp.ge.s32.totalorder %s613_s17, 1 }
   0xb   : > { %p686_p6 = por %p126_p3, %p54_p0  ;;  %p133_p7 = scmp.lt.s32.totalorder %s613_s17, 3 }
   0xc   : > { %s145_s26 = sshll.u32 %s791_s1, 4  ;;  %p381_p9 = scmp.ge.s32.totalorder %s613_s17, 2  ;;  %s146_s26 = int_to_ptr.hbm [resolvable:$true] %s145_s26 }
   0xd   : > { %p694_p8 = pnand %p379_p5, %p133_p7  ;;  %s615_s28 = smov [#allocation6]  }
   0xe   : > { %s147_s29 = sshll.u32 %s615_s28, 4  ;;  %s32_s30 = sadd.s32 1, %s609_s16  ;;  %s148_s29 = int_to_ptr.vmem [resolvable:$true] %s147_s29 }
   0xf   : > { %p397_p10 = pneg %p694_p8  ;;  %p34_p12 = scmp.ge.s32.totalorder %s32_s30, 2 }
  0x10   : > { %s41_s4 = sadd.s32 1, %s601_s14  ;;  %p48_p13 = scmp.ne.s32.totalorder %s601_s14, %s597_s13 }
  0x11   : > { %p398_p11 = pnand %p397_p10, %p671_p1  ;;  %p49_p0 = scmp.eq.s32.totalorder %s613_s17, 0 }
  0x12   : > { %s807_s30 = smov (%p34_p12, %s32_s30), 0  ;;  %p716_p5 = por %p675_p2, %p48_p13 }
  0x13   : > { %400 = dma.hbm_to_vmem [thread:$0]  (!%p398_p11), %s146_s26, 32, %s148_s29, [#allocation7]  }
  0x14   : > { %p710_p3 = por %p49_p0, %p48_p13  ;;  %s36_s7 = ssub.s32 %s609_s16, %s807_s30 }
  0x15   : > { %p410_p7 = scmp.lt.s32.totalorder %s613_s17, 2  ;;  %p39_p10 = scmp.eq.s32.totalorder %s36_s7, 0 }
  0x16   : > { %s161_s8 = sand.u32 1, %s601_s14   ;;  %s383_s11 = sshll.u32 %s609_s16, 1 }
  0x17   : > { %s382_s9 = sshll.u32 %s161_s8, 1  ;;  %s170_s24 = scalar_lea.hbm %s790_s0, %s383_s11 }
  0x18   : > { %s725_s10 = scalar_select %p39_p10, %s601_s14, %s41_s4  }
  0x19   : > { %s165_s25 = scalar_lea.vmem [#allocation3], %s382_s9  ;;  %s172_s21 = sshll.u32 %s170_s24, 4  ;;  %s173_s21 = int_to_ptr.hbm [resolvable:$true] %s172_s21 }
  0x1a   : > { %s174_s26 = sshll.u32 %s165_s25, 4  ;;  %p402_p2 = pnand %p410_p7, %p710_p3  ;;  %s175_s26 = int_to_ptr.vmem [resolvable:$true] %s174_s26 }
  0x1b   : > { %s162_s28 = scalar_lea.sflag [#allocation4], %s161_s8  ;;  %183 = sbr.rel (%p694_p8) target bundleno = 224 (0xe0), region = 32 }
  0x1c   : > { %404 = dma.hbm_to_vmem [thread:$0]  (!%p402_p2), %s173_s21, 32, %s175_s26, %s162_s28  }
  0x1d   : > { %s736_s29 = sand.u32 (!%p694_p8), 1, %s597_s13  }
  0x1e   : > { %s385_s4 = sshll.u32 (!%p694_p8), %s736_s29, 1  ;;  %s186_s7 = scalar_lea.sflag (!%p694_p8), [#allocation4], %s736_s29 }
  0x1f   : > { %s189_s9 = scalar_lea.vmem (!%p694_p8), [#allocation3], %s385_s4 }
  0x20   : > { %580 = dma.done.wait (%p681_p4), %s186_s7, 32  }
  0x21   : > { %582 = vsyncadd (%p681_p4), %s186_s7, 4294967264 }
  0x22   : > { %584 = dma.done.wait (%p671_p1), [#allocation7], 32  }
  0x23   : > { %586 = vsyncadd (%p671_p1), [#allocation7], 4294967264  ;;  %v616_v0 = vmov 0.0   ;;  %vm224_vm0 = vcmask 1041408   ;;  %v223_v1 = vld [vmem:[%s189_s9] sm:$0x3]  ;;  %s288_s8 = scalar_lea.hbm %s793_s3, %s605_s15 }
  0x24   : > { %221 = vst [vmem:[#allocation2] sm:$0x1] %v616_v0  ;;  %v239_v2 = vld [vmem:[#allocation6] sm:$0x3]  ;;  %v225_v3 = vsel %vm224_vm0, %v223_v1, 0.0  ;;  %vm242_vm1 = vcmask 1040384  }
  0x25   : > { %247 = vst [vmem:[#allocation1] sm:$0xff] %v239_v2  ;;  %v226_v4 = vrot.slane %v225_v3, 4  ;;  %vm255_vm2 = vcmask 7168   ;;  %v240_v20 = vld [vmem:[%s792_s2] sm:$0x1]  ;;  %s216_s11 = scalar_lea.vmem [#allocation8], %s736_s29 }
  0x26   : > { %s290_s18 = sshll.u32 %s216_s11, 4  ;;  %s292_s19 = sshll.u32 %s288_s8, 4  ;;  %vm277_vm6 = vcmask 8192   ;;  %s291_s18 = int_to_ptr.vmem [resolvable:$true] %s290_s18  ;;  %s293_s19 = int_to_ptr.hbm [resolvable:$true] %s292_s19 }
  0x27   : > { %v227_v5 = vadd.f32 %v226_v4, %v225_v3  ;;  %s280_s15 = scalar_lea.sflag [#allocation5], %s736_s29  ;;  %s541_s24 = sshra.s32 %s293_s19, 4  ;;  %s542_s24 = int_to_ptr.hbm [resolvable:$true] %s541_s24 }
  0x28   : > { %s543_s25 = scalar_lea.hbm %s542_s24, 1  ;;  %s547_s28 = scalar_lea.hbm %s793_s3, 2 }
  0x29   : > { %v228_v6 = vrot.slane %v227_v5, 2  ;;  %p544_p1 = scmp.ne.s32.totalorder %s542_s24, %s543_s25  ;;  %p548_p11 = scmp.lt.s32.totalorder %s542_s24, %s793_s3 }
  0x2a   : > { %p549_p12 = scmp.lt.s32.totalorder %s547_s28, %s543_s25 }
  0x2b   : > { %v229_v7 = vadd.f32 %v228_v6, %v227_v5  ;;  %v222_v9 = vld [vmem:[#allocation2] sm:$0x1]  ;;  %p545_p4 = pnand %p544_p1, %p716_p5 }
  0x2c   : > { %v249_v15 = vld [vmem:[#allocation1 + $0x1] ss:$9 sm:$0xff]  ;;  %p550_p13 = por %p549_p12, %p548_p11 }
  0x2d   : > { %v230_v8 = vrot.slane %v229_v7, 1  ;;  %p546_p8 = pneg %p545_p4 }
  0x2f   : > { %v231_v10 = vadd.f32 %v230_v8, %v229_v7  ;;  %p551_p0 = pnand %p550_p13, %p546_p8 }
  0x31   : > { %v232_v11 = vadd.f32 %v231_v10, %v222_v9 }
  0x33   : > { %233 = vst [vmem:[#allocation2] sm:$0x1] %v232_v11 }
  0x3a   : > { %v237_v12 = vld [vmem:[#allocation2] sm:$0x1] }
  0x3b   : > { %v238_v13 = vmul.f32 0.125, %v237_v12 }
  0x3d   : > { %v241_v14 = vmul.f32 %v239_v2, %v238_v13  ;;  %v251_v17 = vmul.f32 %v249_v15, %v238_v13 }
  0x3f   : > { %v243_v16 = vsel %vm242_vm1, %v241_v14, 0.0  ;;  %v252_v18 = vsel %vm242_vm1, %v251_v17, 0.0 }
  0x40   : > { %244 = vadd.xlane.f32.xlu0 %v243_v16 }
  0x48   : > { %253 = vadd.xlane.f32.xlu0 %v252_v18 }
  0xb3   : > { %v245_v19 = vpop.xlane.xlu0 %244 }
  0xbb   : > { %v254_v21 = vpop.xlane.xlu0 %253 }
  0xbc   : > { %v256_v22 = vsel %vm255_vm2, %v245_v19, %v254_v21 }
  0xbd   : > { %v257_v23 = vadd.f32 %v256_v22, %v240_v20 }
  0xbf   : > { %v258_v24 = vsub.f32 0.0, %v257_v23 }
  0xc1   : > { %v259_v25 = vmul.f32 1.442695, %v258_v24 }
  0xc3   : > { %463 = vpow2.f32 %v259_v25 }
  0xc9   : > { %v464_v26 = vpop.eup %463 }
  0xca   : > { %v261_v27 = vadd.f32 1.0, %v464_v26 }
  0xcc   : > { %465 = vrcp.f32 %v261_v27  ;;  %v273_v31 = vand.u32 2147483648, %v261_v27  ;;  %v271_v33 = vand.u32 2147483647, %v261_v27  ;;  %vm267_vm4 = vweird.f32 %v261_v27 }
  0xce   : > { %v274_v35 = vor.u32 1.1754944e-38, %v273_v31  ;;  %vm272_vm7 = vcmp.eq.f32.partialorder %v271_v33, 8.507059e+37 }
  0xd2   : > { %v466_v28 = vpop.eup %465 }
  0xd3   : > { %v263_v29 = vmul.f32 %v466_v28, %v261_v27  ;;  %vm268_vm3 = vweird.f32 %v466_v28 }
  0xd4   : > { %vm269_vm5 = vmor %vm267_vm4, %vm268_vm3 }
  0xd5   : > { %v264_v30 = vsub.f32 1.0, %v263_v29 }
  0xd7   : > { %v265_v32 = vmul.f32 %v466_v28, %v264_v30 }
  0xd9   : > { %v266_v34 = vadd.f32 %v466_v28, %v265_v32 }
  0xdb   : > { %v270_v36 = vsel %vm269_vm5, %v466_v28, %v266_v34 }
  0xdc   : > { %v275_v37 = vsel %vm272_vm7, %v274_v35, %v270_v36 }
  0xdd   : > { %278 = vst.msk [vmem:[%s216_s11] sm:$0x1] %vm277_vm6, %v275_v37 }
  0xde   : > { %554 = shalt.err (!%p551_p0)
}
  0xdf   : > { %395 = dma.vmem_to_hbm [thread:$0]  (%p716_p5), %s291_s18, 16, %s293_s19, %s280_s15  }
  0xe0 PF: > { %s304_s29 = sand.u32 1, %s593_s12   ;;  %p406_p3 = pnand %p381_p9, %p686_p6 }
  0xe1   : > { %s305_s9 = scalar_lea.sflag [#allocation5], %s304_s29 }
  0xe2   : > { %p407_p7 = pneg %p406_p3 }
  0xe4   : > { %588 = dma.done.wait (%p407_p7), %s305_s9, 16  }
  0xe5   : > { %590 = vsyncadd (%p407_p7), %s305_s9, 4294967280  ;;  %s20_s17 = sadd.s32 1, %s613_s17   ;;  %s801_s12 = smov %s597_s13 }
  0xe6   : > { %p17_p10 = scmp.ge.s32.totalorder %s20_s17, 4   ;;  %s802_s13 = smov %s601_s14 }
  0xe7   : > { %s803_s14 = smov %s725_s10  ;;  %s804_s15 = smov %s609_s16 }
  0xe8   : > { %s805_s16 = smov %s807_s30  ;;  %19 = sbr.rel (!%p17_p10) target bundleno = 7 (0x7), region = 90 }
  0xed   :  { %310 = vsyncpa [#allocation4], 1 }
  0xee   :  { %312 = vsyncpa [#allocation4 + $0x1], 1 }
  0xef   :  { %313 = vsyncpa [#allocation7], 1 }
  0xf0   :  { %314 = vsyncpa [#allocation5], 1 }
  0xf1   :  { %316 = vsyncpa [#allocation5 + $0x1], 1 }

</bundles_post_ra>
